<compile_context>
chip_gen: v7x
topology: tpu7x:2x2x1
jax: 0.10.0
libtpu: 0.0.40
codegen_flags: <defaults>
</compile_context>

<pallas_src>
import jax
import jax.numpy as jnp
from jax.experimental import pallas as pl
from jax.experimental.pallas import tpu as pltpu


_LANE = 128
_PALLAS_MIN_BYTES = 512 * 1024    # below this, XLA's fused reduce wins on launch overhead


def _round_up(x, m):
    return (x + m - 1) // m * m


def _vmem_capacity_bytes():
    try:
        return int(pltpu.get_tpu_info().vmem_capacity_bytes)
    except Exception:
        return 64 * 1024 * 1024   # conservative fallback == v7x per-core VMEM


def _target_block_bytes(vmem_cap):
    # Per-buffer DMA block target.  ~8 MiB amortizes the ~0.35 us per-grid-step
    # overhead even at v7x's 3.2 TB/s HBM; on the 128 MiB-VMEM parts (v5e/v6e)
    # 4 MiB is already >1 us of DMA per step, so stay a bit smaller to shorten
    # the serialized prologue/epilogue.
    return (8 << 20) if vmem_cap <= (64 << 20) else (4 << 20)


def _min_value(dtype):
    dtype = jnp.dtype(dtype)
    if jnp.issubdtype(dtype, jnp.floating):
        return float("-inf")
    if jnp.issubdtype(dtype, jnp.integer):
        return int(jnp.iinfo(dtype).min)
    if dtype == jnp.bool_:
        return False
    raise NotImplementedError(f"maxpool: unsupported dtype {dtype}")


# ----------------------------------------------------------------------------
# Kernels
# ----------------------------------------------------------------------------

def _make_folded_kernel(points, groups):
    """Small-P row-max with `groups` = 128 // points rows packed per 128 lanes.

    All shifts are expressed with static lane slices + concatenate so the
    shift direction is unambiguous; nothing ever moves across sublanes, so
    garbage rows of a padded trailing row block can never leak into valid rows.
    """
    def kernel(x_ref, o_ref):
        x = x_ref[...]                                   # (TB, 128) lane-dense
        s = points // 2
        while s >= 1:                                    # log2(P) tree steps
            # shifted[:, i] = x[:, i + s]  (circular tail is never extracted)
            shifted = jnp.concatenate([x[:, s:], x[:, :s]], axis=-1)
            x = jnp.maximum(x, shifted)
            s //= 2
        # Lane g*P now holds max(x[g*P : (g+1)*P]) for every row; the window of
        # the last extracted lane (128 - P) ends exactly at lane 127 (no wrap).
        # TODO(synk): a native strided lane gather would make this extraction
        # cheaper; slices+concat is used for guaranteed lowering.
        heads = [x[:, i * points:i * points + 1] for i in range(groups)]
        o_ref[...] = jnp.concatenate(heads, axis=-1)     # (TB, G)
    return kernel


def _make_rowmax_kernel(points, block_points, needs_mask, fill_value):
    """Generic row-max: grid = (row blocks, point blocks).

    The point axis is an innermost 'arbitrary' reduction accumulated directly
    in the resident output block (max is exact in any dtype -> no scratch).
    """
    def kernel(x_ref, o_ref):
        x = x_ref[...]                                   # (TB, block_points)
        if needs_mask:
            # The trailing point block may be padded past P with garbage.
            k = pl.program_id(1)
            col = jax.lax.broadcasted_iota(jnp.int32, x.shape, dimension=1)
            x = jnp.where(k * block_points + col < points, x,
                          jnp.asarray(fill_value, dtype=x.dtype))
        part = jnp.max(x, axis=-1)                       # (TB,)

        @pl.when(pl.program_id(1) == 0)
        def _init():
            o_ref[...] = part

        @pl.when(pl.program_id(1) != 0)
        def _accumulate():
            o_ref[...] = jnp.maximum(o_ref[...], part)
    return kernel


# ----------------------------------------------------------------------------
# Wrappers
# ----------------------------------------------------------------------------

def _maxpool_folded(x2, b, c):
    """Small-P path (P < 128, P | 128, N*P % 128 == 0): lane-dense DMA."""
    n, p = x2.shape
    groups = _LANE // p                      # rows packed per 128-lane row
    m = n // groups                          # folded rows
    xf = x2.reshape(m, _LANE)                # free row-major view

    itemsize = jnp.dtype(x2.dtype).itemsize
    vmem_cap = _vmem_capacity_bytes()
    target = _target_block_bytes(vmem_cap)
    budget = vmem_cap // 2
    row_align = 8 * max(1, 4 // itemsize)    # sublane tile (8/16/32 by dtype)

    # Double-buffered (TB,128) input + double-buffered (TB,G) output (which
    # Mosaic also pads to 128 lanes) -> ~4 * TB * 128 * itemsize of VMEM.
    tb_bytes = min(target, budget // 4)
    tb = tb_bytes // (_LANE * itemsize)
    tb = max(row_align, (tb // row_align) * row_align)
    # Keep >= 4 grid steps whenever possible: DMA/compute overlap + both v7x TCs.
    if m > 4 * row_align:
        tb = min(tb, _round_up(pl.cdiv(m, 4), row_align))
    if tb >= m:
        tb = m                               # single block == full array dims

    need = 4 * tb * _LANE * itemsize + (4 << 20)
    vmem_limit = int(min(vmem_cap, max(need, 32 << 20)))

    out = pl.pallas_call(
        _make_folded_kernel(p, groups),
        out_shape=jax.ShapeDtypeStruct((m, groups), x2.dtype),
        grid=(pl.cdiv(m, tb),),
        in_specs=[pl.BlockSpec((tb, _LANE), lambda i: (i, 0))],
        out_specs=pl.BlockSpec((tb, groups), lambda i: (i, 0)),
        compiler_params=pltpu.CompilerParams(
            dimension_semantics=("parallel",),
            vmem_limit_bytes=vmem_limit,
        ),
    )(xf)
    # (M, G) -> (N,) -> (B, C): free row-major views.
    return out.reshape(b, c)


def _maxpool_generic(x2, b, c, max_block_points=None):
    """Generic path: P on the lane axis, optional point-block reduction axis."""
    n, p = x2.shape
    itemsize = jnp.dtype(x2.dtype).itemsize
    vmem_cap = _vmem_capacity_bytes()
    target = _target_block_bytes(vmem_cap)
    budget = vmem_cap // 2

    if max_block_points is None:
        # Widest point block such that a 256-row tile still fits the byte target.
        max_block_points = max(_LANE, (target // (256 * itemsize)) // _LANE * _LANE)
    if p <= max_block_points:
        block_points, num_k = p, 1
    else:
        block_points = max(_LANE, (max_block_points // _LANE) * _LANE)
        num_k = pl.cdiv(p, block_points)

    p_pad = _round_up(block_points, _LANE)   # Mosaic pads lanes to 128
    tb = min(target, budget // 2) // (p_pad * itemsize)
    tb = max(_LANE, (tb // _LANE) * _LANE)   # 128-multiple -> unmasked flat stores
    if n > 4 * _LANE:
        tb = min(tb, _round_up(pl.cdiv(n, 4), _LANE))
    if tb >= n:
        tb = n

    need = (2 * tb * p_pad + 2 * _round_up(tb, 1024)) * itemsize + (4 << 20)
    vmem_limit = int(min(vmem_cap, max(need, 32 << 20)))

    out_flat = pl.pallas_call(
        _make_rowmax_kernel(p, block_points, num_k > 1, _min_value(x2.dtype)),
        out_shape=jax.ShapeDtypeStruct((n,), x2.dtype),
        grid=(pl.cdiv(n, tb), num_k),
        in_specs=[pl.BlockSpec((tb, block_points), lambda i, k: (i, k))],
        out_specs=pl.BlockSpec((tb,), lambda i, k: (i,)),
        compiler_params=pltpu.CompilerParams(
            dimension_semantics=("parallel", "arbitrary"),
            vmem_limit_bytes=vmem_limit,
        ),
    )(x2)
    return out_flat.reshape(b, c)


def maxpool_forward(input_data, num_channels, num_points, *,
                    force_pallas=False, max_block_points=None):
    """Equivalent of MaxPool(num_channels, num_points).forward(input_data)."""
    x = jnp.asarray(input_data)
    x3 = x.reshape(-1, num_channels, num_points)
    b, c, p = x3.shape
    n = b * c
    x2 = x3.reshape(n, p)

    if p == 1:                               # max over one point == identity
        return x2.reshape(b, c)

    # Tiny problems: pallas_call fixed overhead dwarfs the work; let XLA fuse it.
    if not force_pallas and x2.size * jnp.dtype(x2.dtype).itemsize < _PALLAS_MIN_BYTES:
        return jnp.max(x2, axis=-1).reshape(b, c)

    if (max_block_points is None and p < _LANE and _LANE % p == 0
            and (n * p) % _LANE == 0):
        return _maxpool_folded(x2, b, c)
    return _maxpool_generic(x2, b, c, max_block_points=max_block_points)


class MaxPool:
    """Thin functional mirror of the PyTorch module."""

    def __init__(self, num_channels, num_points):
        self.num_channels = num_channels
        self.num_points = num_points

    def __call__(self, input_data, **kwargs):
        return maxpool_forward(input_data, self.num_channels, self.num_points,
                               **kwargs)


if __name__ == "__main__":
    num_channels = 4
    num_points = 16

    key = jax.random.PRNGKey(0)
    k0, k1, k2, k3 = jax.random.split(key, 4)

    pool = MaxPool(num_channels, num_points)

    # 1) Small demo input, lane-folded kernel (P=16 -> 8 rows per 128 lanes).
    x_small = jax.random.normal(k0, (2, 4, 16, 16), dtype=jnp.float32)
    out_small = jax.block_until_ready(pool(x_small, force_pallas=True))
    ref_small = jnp.max(x_small.reshape(-1, num_channels, num_points), axis=-1)
    assert out_small.shape == ref_small.shape, out_small.shape
    assert jnp.array_equal(out_small, ref_small), "small folded case mismatch"

    # 2) Larger case: multi-block folded pipeline with a partial trailing block.
    x_big = jax.random.normal(
        k1, (16500, num_channels, num_points), dtype=jnp.float32)
    out_big = jax.block_until_ready(pool(x_big))
    ref_big = jnp.max(x_big, axis=-1)
    assert out_big.shape == ref_big.shape, out_big.shape
    assert jnp.array_equal(out_big, ref_big), "big folded case mismatch"

    # 3) Generic path (P does not divide 128).
    x_gen = jax.random.normal(k2, (2, 6, 40), dtype=jnp.float32)
    out_gen = jax.block_until_ready(
        maxpool_forward(x_gen, 6, 40, force_pallas=True))
    ref_gen = jnp.max(x_gen.reshape(-1, 6, 40), axis=-1)
    assert jnp.array_equal(out_gen, ref_gen), "generic case mismatch"

    # 4) Generic path with a tiled points axis (running-max accumulator + mask).
    x_tiled = jax.random.normal(k3, (2, 4, 300), dtype=jnp.float32)
    out_tiled = jax.block_until_ready(
        maxpool_forward(x_tiled, 4, 300, force_pallas=True,
                        max_block_points=128))
    ref_tiled = jnp.max(x_tiled.reshape(-1, 4, 300), axis=-1)
    assert jnp.array_equal(out_tiled, ref_tiled), "tiled-points case mismatch"

    print("KERNEL_OK")
</pallas_src>

<mosaic_0001>
module attributes {stable_mosaic.version = 11 : i64} {
  func.func @kernel(%arg0: i32, %arg1: memref<16x128xf32, #tpu.memory_space<vmem>>, %arg2: memref<16x8xf32, #tpu.memory_space<vmem>>) attributes {dimension_semantics = [#tpu.dimension_semantics<parallel>], iteration_bounds = array<i64: 1>, scalar_prefetch = 0 : i64, scratch_operands = 0 : i64, tpu.core_type = #tpu.core_type<tc>, window_params = [{transform_indices = @transform_0, window_bounds = array<i64: 16, 128>}, {transform_indices = @transform_1, window_bounds = array<i64: 16, 8>}]} {
    %c0 = arith.constant 0 : index
    %c0_0 = arith.constant 0 : index
    %0 = vector.load %arg1[%c0, %c0_0] : memref<16x128xf32, #tpu.memory_space<vmem>>, vector<16x128xf32>
    %1 = vector.extract_strided_slice %0 {offsets = [0, 8], sizes = [16, 120], strides = [1, 1]} : vector<16x128xf32> to vector<16x120xf32>
    %2 = vector.extract_strided_slice %0 {offsets = [0, 0], sizes = [16, 8], strides = [1, 1]} : vector<16x128xf32> to vector<16x8xf32>
    %3 = tpu.concatenate %1, %2 in 1 : vector<16x120xf32>, vector<16x8xf32> -> vector<16x128xf32>
    %4 = arith.maximumf %0, %3 : vector<16x128xf32>
    %5 = vector.extract_strided_slice %4 {offsets = [0, 4], sizes = [16, 124], strides = [1, 1]} : vector<16x128xf32> to vector<16x124xf32>
    %6 = vector.extract_strided_slice %4 {offsets = [0, 0], sizes = [16, 4], strides = [1, 1]} : vector<16x128xf32> to vector<16x4xf32>
    %7 = tpu.concatenate %5, %6 in 1 : vector<16x124xf32>, vector<16x4xf32> -> vector<16x128xf32>
    %8 = arith.maximumf %4, %7 : vector<16x128xf32>
    %9 = vector.extract_strided_slice %8 {offsets = [0, 2], sizes = [16, 126], strides = [1, 1]} : vector<16x128xf32> to vector<16x126xf32>
    %10 = vector.extract_strided_slice %8 {offsets = [0, 0], sizes = [16, 2], strides = [1, 1]} : vector<16x128xf32> to vector<16x2xf32>
    %11 = tpu.concatenate %9, %10 in 1 : vector<16x126xf32>, vector<16x2xf32> -> vector<16x128xf32>
    %12 = arith.maximumf %8, %11 : vector<16x128xf32>
    %13 = vector.extract_strided_slice %12 {offsets = [0, 1], sizes = [16, 127], strides = [1, 1]} : vector<16x128xf32> to vector<16x127xf32>
    %14 = vector.extract_strided_slice %12 {offsets = [0, 0], sizes = [16, 1], strides = [1, 1]} : vector<16x128xf32> to vector<16x1xf32>
    %15 = tpu.concatenate %13, %14 in 1 : vector<16x127xf32>, vector<16x1xf32> -> vector<16x128xf32>
    %16 = arith.maximumf %12, %15 : vector<16x128xf32>
    %17 = vector.extract_strided_slice %16 {offsets = [0, 0], sizes = [16, 1], strides = [1, 1]} : vector<16x128xf32> to vector<16x1xf32>
    %18 = vector.extract_strided_slice %16 {offsets = [0, 16], sizes = [16, 1], strides = [1, 1]} : vector<16x128xf32> to vector<16x1xf32>
    %19 = vector.extract_strided_slice %16 {offsets = [0, 32], sizes = [16, 1], strides = [1, 1]} : vector<16x128xf32> to vector<16x1xf32>
    %20 = vector.extract_strided_slice %16 {offsets = [0, 48], sizes = [16, 1], strides = [1, 1]} : vector<16x128xf32> to vector<16x1xf32>
    %21 = vector.extract_strided_slice %16 {offsets = [0, 64], sizes = [16, 1], strides = [1, 1]} : vector<16x128xf32> to vector<16x1xf32>
    %22 = vector.extract_strided_slice %16 {offsets = [0, 80], sizes = [16, 1], strides = [1, 1]} : vector<16x128xf32> to vector<16x1xf32>
    %23 = vector.extract_strided_slice %16 {offsets = [0, 96], sizes = [16, 1], strides = [1, 1]} : vector<16x128xf32> to vector<16x1xf32>
    %24 = vector.extract_strided_slice %16 {offsets = [0, 112], sizes = [16, 1], strides = [1, 1]} : vector<16x128xf32> to vector<16x1xf32>
    %25 = tpu.concatenate %17, %18, %19, %20, %21, %22, %23, %24 in 1 : vector<16x1xf32>, vector<16x1xf32>, vector<16x1xf32>, vector<16x1xf32>, vector<16x1xf32>, vector<16x1xf32>, vector<16x1xf32>, vector<16x1xf32> -> vector<16x8xf32>
    %c0_1 = arith.constant 0 : index
    %c0_2 = arith.constant 0 : index
    %26 = vector.load %arg2[%c0_1, %c0_2] : memref<16x8xf32, #tpu.memory_space<vmem>>, vector<16x8xf32>
    tpu.vector_store %arg2[%c0_1, %c0_2], %25 {strides = array<i32>} : memref<16x8xf32, #tpu.memory_space<vmem>>, vector<16x8xf32>,
    return
  }
  func.func @transform_0(%arg0: i32) -> (i32, i32) {
    %c0_i32 = arith.constant 0 : i32
    %c0_i32_0 = arith.constant 0 : i32
    return %arg0, %c0_i32 : i32, i32
  }
  func.func @transform_1(%arg0: i32) -> (i32, i32) {
    %c0_i32 = arith.constant 0 : i32
    %c0_i32_0 = arith.constant 0 : i32
    return %arg0, %c0_i32 : i32, i32
  }
}

</mosaic_0001>

<bundles_post_ra>
// kernel: tpu_custom_call.1
= control target key start
LH: loop header
LB: loop body
LE: loop exit
PB: predicated region body
PF: predicated region fallthrough
CT: control target
= control target key end

     0   :  { %6 = vsyncpa [#allocation3], 0  ;;  %s175_s6 = smov [#allocation2]   ;;  %s223_s0 = inlined_call_operand.hbm [shape: f32[16,128], index: 0, kind: input, shape index: {}]   ;;  %s224_s1 = inlined_call_operand.vmem [shape: f32[16,8], index: 1, kind: output, shape index: {}]  }
   0x1   :  { %s12_s7 = sshll.u32 %s175_s6, 4  ;;  %s151_s10 = scalar_lea.hbm %s223_s0, 256  ;;  %s13_s7 = int_to_ptr.vmem [resolvable:$true] %s12_s7 }
   0x2   :  { %p152_p0 = scmp.ne.s32.totalorder %s223_s0, %s151_s10  ;;  %p155_p1 = scmp.lt.u32.totalorder %s151_s10, %s223_s0 }
   0x4   :  { %p157_p2 = pnand %p155_p1, %p152_p0 }
   0x6   :  { %160 = shalt.err (!%p157_p2)
}
   0x7   :  { %s161_s15 = scalar_lea.vmem %s13_s7, 256  ;;  %p166_p4 = scmp.lt.s32.totalorder %s13_s7, %s13_s7 }
   0x8   :  { %p162_p3 = scmp.ne.s32.totalorder %s13_s7, %s161_s15  ;;  %p167_p5 = scmp.lt.s32.totalorder %s161_s15, %s161_s15 }
   0xa   :  { %p168_p6 = por %p167_p5, %p166_p4 }
   0xc   :  { %p169_p7 = pnand %p168_p6, %p162_p3 }
   0xe   :  { %172 = shalt.err (!%p169_p7)
}
   0xf   :  { %s176_s16 = smov 128   ;;  %s177_s17 = smov 8  }
  0x10   :  { %18 = dma.hbm_to_vmem [thread:$0]  %s223_s0, 256, %s13_s7, [#allocation3], %s176_s16, %s176_s16, %s177_s17  }
  0x11   :  { %173 = dma.done.wait [#allocation3], 256  }
  0x12   :  { %174 = vsyncadd [#allocation3], 4294967040  ;;  %v22_v0 = vld [vmem:[#allocation2] sm:$0xff]  ;;  %s178_s20 = smov 120   ;;  %v23_v1 = vld [vmem:[#allocation2 + $0x8] sm:$0xff]  ;;  %s179_s21 = smov 124  }
  0x13   :  { %26 = vrot.lane.b32.xlu0 %v22_v0, %s178_s20  ;;  %s180_s22 = smov 126   ;;  %s181_s0 = smov 127   ;;  %vm108_vm0 = vcmask 7168   ;;  %vm111_vm1 = vcmask 15360   ;;  %vm114_vm2 = vcmask 23552   ;;  %vm117_vm3 = vcmask 31744  }
  0x14   :  { %s182_s23 = smov 113   ;;  %s183_s24 = smov 98   ;;  %vm120_vm4 = vcmask 39936   ;;  %vm123_vm5 = vcmask 48128   ;;  %vm126_vm6 = vcmask 56320   ;;  %vm129_vm7 = vcmask 64512  }
  0x15   :  { %s184_s25 = smov 83   ;;  %s185_s26 = smov 68  }
  0x16   :  { %s186_s27 = smov 53   ;;  %s187_s28 = smov 38  }
  0x17   :  { %28 = vrot.lane.b32.xlu0 %v23_v1, %s178_s20  ;;  %s188_s29 = smov 23  }
  0x85   :  { %v27_v2 = vpop.permute.xlu0 %26 }
  0x86   :  { %v32_v3 = vmax.f32 %v22_v0, %v27_v2 }
  0x88   :  { %36 = vrot.lane.b32.xlu1 %v32_v3, %s179_s21 }
  0x89   :  { %v29_v4 = vpop.permute.xlu0 %28 }
  0x8a   :  { %v33_v5 = vmax.f32 %v23_v1, %v29_v4 }
  0x8c   :  { %38 = vrot.lane.b32.xlu1 %v33_v5, %s179_s21 }
  0xfa   :  { %v37_v6 = vpop.permute.xlu1 %36 }
  0xfb   :  { %v42_v7 = vmax.f32 %v32_v3, %v37_v6 }
  0xfd   :  { %46 = vrot.lane.b32.xlu0 %v42_v7, %s180_s22 }
  0xfe   :  { %v39_v8 = vpop.permute.xlu1 %38 }
  0xff   :  { %v43_v9 = vmax.f32 %v33_v5, %v39_v8 }
 0x101   :  { %48 = vrot.lane.b32.xlu1 %v43_v9, %s180_s22 }
 0x16f   :  { %v47_v10 = vpop.permute.xlu0 %46 }
 0x170   :  { %v52_v11 = vmax.f32 %v42_v7, %v47_v10 }
 0x172   :  { %56 = vrot.lane.b32.xlu0 %v52_v11, %s181_s0 }
 0x173   :  { %v49_v12 = vpop.permute.xlu1 %48 }
 0x174   :  { %v53_v13 = vmax.f32 %v43_v9, %v49_v12 }
 0x176   :  { %58 = vrot.lane.b32.xlu1 %v53_v13, %s181_s0 }
 0x1e4   :  { %v57_v14 = vpop.permute.xlu0 %56 }
 0x1e5   :  { %v62_v15 = vmax.f32 %v52_v11, %v57_v14 }
 0x1e7   :  { %66 = vrot.lane.b32.xlu0 %v62_v15, %s182_s23 }
 0x1e8   :  { %v59_v16 = vpop.permute.xlu1 %58 }
 0x1e9   :  { %v63_v17 = vmax.f32 %v53_v13, %v59_v16 }
 0x1eb   :  { %68 = vrot.lane.b32.xlu1 %v63_v17, %s182_s23  ;;  %72 = vrot.lane.b32.xlu0 %v62_v15, %s183_s24 }
 0x1ef   :  { %74 = vrot.lane.b32.xlu1 %v63_v17, %s183_s24  ;;  %78 = vrot.lane.b32.xlu0 %v62_v15, %s184_s25 }
 0x1f3   :  { %80 = vrot.lane.b32.xlu1 %v63_v17, %s184_s25  ;;  %84 = vrot.lane.b32.xlu0 %v62_v15, %s185_s26 }
 0x1f7   :  { %86 = vrot.lane.b32.xlu1 %v63_v17, %s185_s26  ;;  %90 = vrot.lane.b32.xlu0 %v62_v15, %s186_s27 }
 0x1fb   :  { %92 = vrot.lane.b32.xlu1 %v63_v17, %s186_s27  ;;  %96 = vrot.lane.b32.xlu0 %v62_v15, %s187_s28 }
 0x1ff   :  { %98 = vrot.lane.b32.xlu1 %v63_v17, %s187_s28  ;;  %102 = vrot.lane.b32.xlu0 %v62_v15, %s188_s29 }
 0x203   :  { %104 = vrot.lane.b32.xlu1 %v63_v17, %s188_s29 }
 0x259   :  { %v67_v18 = vpop.permute.xlu0 %66 }
 0x25a   :  { %v109_v27 = vsel %vm108_vm0, %v62_v15, %v67_v18 }
 0x25d   :  { %v69_v19 = vpop.permute.xlu1 %68  ;;  %v73_v20 = vpop.permute.xlu0 %72 }
 0x25e   :  { %v112_v28 = vsel %vm111_vm1, %v109_v27, %v73_v20  ;;  %v110_v33 = vsel %vm108_vm0, %v63_v17, %v69_v19 }
 0x261   :  { %v75_v21 = vpop.permute.xlu1 %74  ;;  %v79_v22 = vpop.permute.xlu0 %78 }
 0x262   :  { %v115_v31 = vsel %vm114_vm2, %v112_v28, %v79_v22  ;;  %v113_v35 = vsel %vm111_vm1, %v110_v33, %v75_v21 }
 0x265   :  { %v81_v23 = vpop.permute.xlu1 %80  ;;  %v85_v24 = vpop.permute.xlu0 %84 }
 0x266   :  { %v118_v32 = vsel %vm117_vm3, %v115_v31, %v85_v24  ;;  %v116_v39 = vsel %vm114_vm2, %v113_v35, %v81_v23 }
 0x269   :  { %v87_v25 = vpop.permute.xlu1 %86  ;;  %v91_v26 = vpop.permute.xlu0 %90 }
 0x26a   :  { %v121_v34 = vsel %vm120_vm4, %v118_v32, %v91_v26  ;;  %v119_v41 = vsel %vm117_vm3, %v116_v39, %v87_v25 }
 0x26d   :  { %v93_v29 = vpop.permute.xlu1 %92  ;;  %v97_v30 = vpop.permute.xlu0 %96 }
 0x26e   :  { %v124_v36 = vsel %vm123_vm5, %v121_v34, %v97_v30  ;;  %v122_v42 = vsel %vm120_vm4, %v119_v41, %v93_v29 }
 0x271   :  { %v99_v37 = vpop.permute.xlu1 %98  ;;  %v103_v38 = vpop.permute.xlu0 %102 }
 0x272   :  { %v127_v40 = vsel %vm126_vm6, %v124_v36, %v103_v38  ;;  %v125_v43 = vsel %vm123_vm5, %v122_v42, %v99_v37 }
 0x273   :  { %130 = vst.msk [vmem:[%s224_s1] sm:$0xff] %vm129_vm7, %v127_v40 }
 0x275   :  { %v105_v44 = vpop.permute.xlu1 %104 }
 0x276   :  { %v128_v45 = vsel %vm126_vm6, %v125_v43, %v105_v44 }
 0x277   :  { %131 = vst.msk [vmem:[%s224_s1 + $0x8] sm:$0xff] %vm129_vm7, %v128_v45 }
 0x278   :  { %136 = vsyncpa [#allocation3], 1 }

</bundles_post_ra>
